<compile_context>
chip_gen: v7x
topology: tpu7x:2x2x1
jax: 0.10.0
libtpu: 0.0.40
codegen_flags: <defaults>
</compile_context>

<pallas_src>
import jax
import jax.numpy as jnp
from jax import lax
from jax.experimental import pallas as pl
from jax.experimental.pallas import tpu as pltpu


def _matmul_bias_relu_kernel(wt_ref, p_ref, b_ref, o_ref):
    # wt_ref : (Cout, K*K*Cin)   transposed conv weights (resident across grid)
    # p_ref  : (K*K*Cin, TILE)   im2col patches, columns = output pixels (lane-dense)
    # b_ref  : (Cout, 1)         bias
    # o_ref  : (Cout, TILE)      conv output tile (pre pixel-shuffle), ReLU applied
    acc = jnp.dot(wt_ref[...], p_ref[...], preferred_element_type=jnp.float32)
    acc = acc + b_ref[...]              # (Cout,1) lane-broadcast, f32 epilogue
    o_ref[...] = jnp.maximum(acc, 0.0).astype(o_ref.dtype)


def upsampler_forward(x_nchw, weight, bias, scale, compute_dtype=jnp.float32):
    """x_nchw: (N, C, H, W); weight: (C*r*r, C, K, K); bias: (C*r*r,)."""
    N, C, H, W = x_nchw.shape
    Cout, Cin, K, _ = weight.shape
    assert Cin == C and Cout == C * scale * scale
    pad = K // 2
    KKC = K * K * Cin

    # ---- glue: NCHW -> NHWC, zero-pad, build im2col, lane-dense layouts ----
    x_nhwc = jnp.transpose(x_nchw, (0, 2, 3, 1)).astype(compute_dtype)
    x_pad = jnp.pad(x_nhwc, ((0, 0), (pad, pad), (pad, pad), (0, 0)))
    # patch channel order: (kh*K + kw)*Cin + cin
    cols = jnp.concatenate(
        [x_pad[:, kh:kh + H, kw:kw + W, :] for kh in range(K) for kw in range(K)],
        axis=-1)                                          # (N, H, W, K*K*Cin)
    total = N * H * W
    patches_t = jnp.transpose(cols.reshape(total, KKC))   # (K*K*Cin, N*H*W)
    # weight (Cout, Cin, K, K) -> (Cout, K, K, Cin) -> (Cout, K*K*Cin)  (matches patch order)
    wt = jnp.transpose(weight, (0, 2, 3, 1)).reshape(Cout, KKC).astype(compute_dtype)
    b2d = bias.reshape(Cout, 1).astype(jnp.float32)

    # Column tile: multiple of 128 (lane-dense); >=2 grid steps here keeps both
    # v7x TensorCores busy while collapsing the per-batch grid overhead.
    if total % 256 == 0:
        tile = 256
    elif total % 128 == 0:
        tile = 128
    else:
        tile = total
    grid = (total // tile,)

    flops = 2 * Cout * KKC * total
    bytes_accessed = (patches_t.size + wt.size + Cout * total) * 4 + Cout * 4

    y = pl.pallas_call(
        _matmul_bias_relu_kernel,
        out_shape=jax.ShapeDtypeStruct((Cout, total), jnp.float32),
        grid=grid,
        in_specs=[
            pl.BlockSpec((Cout, KKC), lambda t: (0, 0)),
            pl.BlockSpec((KKC, tile), lambda t: (0, t)),
            pl.BlockSpec((Cout, 1), lambda t: (0, 0)),
        ],
        out_specs=pl.BlockSpec((Cout, tile), lambda t: (0, t)),
        compiler_params=pltpu.CompilerParams(
            dimension_semantics=("parallel",)),
        cost_estimate=pl.CostEstimate(
            flops=flops, transcendentals=0, bytes_accessed=bytes_accessed),
    )(wt, patches_t, b2d)

    # ---- glue: undo column layout, PixelShuffle(r), back to NCHW ----
    r = scale
    y = y.reshape(Cout, N, H, W)                  # columns were (n, h, w) row-major
    y = jnp.transpose(y, (1, 0, 2, 3))            # (N, Cout, H, W)  conv output
    y = y.reshape(N, C, r, r, H, W)
    y = jnp.transpose(y, (0, 1, 4, 2, 5, 3))      # (N, C, H, r, W, r)
    return y.reshape(N, C, H * r, W * r)


def _reference(x_nchw, weight, bias, scale):
    # pure-JAX reference (conv + bias + pixel shuffle + relu)
    pad = weight.shape[-1] // 2
    y = lax.conv_general_dilated(
        x_nchw.astype(jnp.float32), weight.astype(jnp.float32),
        window_strides=(1, 1), padding=[(pad, pad), (pad, pad)],
        dimension_numbers=("NCHW", "OIHW", "NCHW"))
    y = y + bias.reshape(1, -1, 1, 1)
    N, CRR, H, W = y.shape
    r = scale
    C = CRR // (r * r)
    y = y.reshape(N, C, r, r, H, W)
    y = jnp.transpose(y, (0, 1, 4, 2, 5, 3)).reshape(N, C, H * r, W * r)
    return jnp.maximum(y, 0.0)


if __name__ == "__main__":
    # Small shapes consistent with the module: N=2, C=4, H=W=16, scale=2, k=3
    N, C, H, W = 2, 4, 16, 16
    scale, K = 2, 3
    Cout = C * scale * scale

    key = jax.random.PRNGKey(0)
    kx, kw = jax.random.split(key)
    x = jax.random.normal(kx, (N, C, H, W), dtype=jnp.float32)
    # _conv init: weight ~ N(0, 0.02), bias = 0
    weight = 0.02 * jax.random.normal(kw, (Cout, C, K, K), dtype=jnp.float32)
    bias = jnp.zeros((Cout,), dtype=jnp.float32)

    out = jax.block_until_ready(upsampler_forward(x, weight, bias, scale))
    ref = jax.block_until_ready(_reference(x, weight, bias, scale))

    assert out.shape == (N, C, H * scale, W * scale)
    assert jnp.max(jnp.abs(out - ref)) < 1e-4

    print("KERNEL_OK")
</pallas_src>

<mosaic_0001>
module attributes {stable_mosaic.version = 11 : i64} {
  func.func @_matmul_bias_relu_kernel(%arg0: i32, %arg1: memref<16x36xf32, #tpu.memory_space<vmem>>, %arg2: memref<36x256xf32, #tpu.memory_space<vmem>>, %arg3: memref<16x1xf32, #tpu.memory_space<vmem>>, %arg4: memref<16x256xf32, #tpu.memory_space<vmem>>) attributes {dimension_semantics = [#tpu.dimension_semantics<parallel>], iteration_bounds = array<i64: 2>, scalar_prefetch = 0 : i64, scratch_operands = 0 : i64, tpu.core_type = #tpu.core_type<tc>, window_params = [{pipeline_mode = #tpu.pipeline_mode<synchronous>, transform_indices = @transform_0, window_bounds = array<i64: 16, 36>}, {transform_indices = @transform_1, window_bounds = array<i64: 36, 256>}, {pipeline_mode = #tpu.pipeline_mode<synchronous>, transform_indices = @transform_2, window_bounds = array<i64: 16, 1>}, {transform_indices = @transform_3, window_bounds = array<i64: 16, 256>}]} {
    %c0 = arith.constant 0 : index
    %c0_0 = arith.constant 0 : index
    %0 = vector.load %arg1[%c0, %c0_0] : memref<16x36xf32, #tpu.memory_space<vmem>>, vector<16x36xf32>
    %c0_1 = arith.constant 0 : index
    %c0_2 = arith.constant 0 : index
    %1 = vector.load %arg2[%c0_1, %c0_2] : memref<36x256xf32, #tpu.memory_space<vmem>>, vector<36x256xf32>
    %cst = arith.constant dense<0.000000e+00> : vector<16x256xf32>
    %2 = tpu.matmul %0, %1, %cst {dimension_numbers = #tpu.dot_dimension_numbers<[1], [0], [0], [1], [0, 0, 1, 1], [], []>} : vector<16x36xf32>, vector<36x256xf32>, vector<16x256xf32> -> vector<16x256xf32>
    %c0_3 = arith.constant 0 : index
    %c0_4 = arith.constant 0 : index
    %3 = vector.load %arg3[%c0_3, %c0_4] : memref<16x1xf32, #tpu.memory_space<vmem>>, vector<16x1xf32>
    %4 = vector.broadcast %3 : vector<16x1xf32> to vector<16x256xf32>
    %5 = arith.addf %2, %4 : vector<16x256xf32>
    %cst_5 = arith.constant 0.000000e+00 : f32
    %6 = vector.broadcast %cst_5 : f32 to vector<16x256xf32>
    %7 = arith.maximumf %5, %6 : vector<16x256xf32>
    %c0_6 = arith.constant 0 : index
    %c0_7 = arith.constant 0 : index
    %8 = vector.load %arg4[%c0_6, %c0_7] : memref<16x256xf32, #tpu.memory_space<vmem>>, vector<16x256xf32>
    tpu.vector_store %arg4[%c0_6, %c0_7], %7 {strides = array<i32>} : memref<16x256xf32, #tpu.memory_space<vmem>>, vector<16x256xf32>,
    return
  }
  func.func @transform_0(%arg0: i32) -> (i32, i32) {
    %c0_i32 = arith.constant 0 : i32
    %c0_i32_0 = arith.constant 0 : i32
    %c0_i32_1 = arith.constant 0 : i32
    return %c0_i32, %c0_i32_0 : i32, i32
  }
  func.func @transform_1(%arg0: i32) -> (i32, i32) {
    %c0_i32 = arith.constant 0 : i32
    %c0_i32_0 = arith.constant 0 : i32
    return %c0_i32, %arg0 : i32, i32
  }
  func.func @transform_2(%arg0: i32) -> (i32, i32) {
    %c0_i32 = arith.constant 0 : i32
    %c0_i32_0 = arith.constant 0 : i32
    %c0_i32_1 = arith.constant 0 : i32
    return %c0_i32, %c0_i32_0 : i32, i32
  }
  func.func @transform_3(%arg0: i32) -> (i32, i32) {
    %c0_i32 = arith.constant 0 : i32
    %c0_i32_0 = arith.constant 0 : i32
    return %c0_i32, %arg0 : i32, i32
  }
}

</mosaic_0001>

<bundles_post_ra>
// kernel: tpu_custom_call.1
= control target key start
LH: loop header
LB: loop body
LE: loop exit
PB: predicated region body
PF: predicated region fallthrough
CT: control target
= control target key end

     0   :  { %8 = vsyncpa [#allocation3], 0  ;;  %s801_s0 = inlined_call_operand.vmem [shape: f32[16,36], index: 0, kind: input, shape index: {}]   ;;  %s802_s1 = inlined_call_operand.hbm [shape: f32[36,512], index: 1, kind: input, shape index: {}]   ;;  %s803_s2 = inlined_call_operand.vmem [shape: f32[16,1], index: 2, kind: input, shape index: {}]   ;;  %s804_s3 = inlined_call_operand.hbm [shape: f32[16,512], index: 3, kind: output, shape index: {}]  }
   0x1   :  { %10 = vsyncpa [#allocation3 + $0x1], 0 }
   0x2   :  { %11 = vsyncpa [#allocation4], 0 }
   0x3   :  { %13 = vsyncpa [#allocation4 + $0x1], 0  ;;  %s618_s12 = smov 0   ;;  %s620_s13 = smov 0  }
   0x4   :  { %s622_s14 = smov 0   ;;  %s624_s15 = smov 0  }
   0x5 LB: > { %s639_s16 = sadd.s32 4294967295, %s586_s15   ;;  %s401_s17 = sadd.s32 4294967294, %s586_s15   ;;  %s586_s15 = sphi %s624_s15, %s817_s15   ;;  %s582_s14 = sphi %s622_s14, %s816_s14   ;;  %s578_s13 = sphi %s620_s13, %s815_s13   ;;  %s574_s12 = sphi %s618_s12, %s814_s12  }
   0x6   : > { %s643_s18 = sadd.s32 1, %s586_s15   ;;  %s47_s19 = sadd.s32 1, %s582_s14 }
   0x7   : > { %s44_s20 = ssub.s32 %s586_s15, %s643_s18  ;;  %p54_p0 = scmp.ne.s32.totalorder %s582_s14, %s578_s13 }
   0x8   : > { %p45_p1 = scmp.eq.s32.totalorder %s44_s20, 0  ;;  %p55_p2 = scmp.eq.s32.totalorder %s586_s15, 0 }
   0x9   : > { %p60_p3 = scmp.ne.s32.totalorder %s578_s13, %s574_s12  ;;  %p61_p4 = scmp.eq.s32.totalorder %s639_s16, 0 }
   0xa   : > { %s655_s21 = scalar_select %p45_p1, %s582_s14, %s47_s19  }
   0xb   : > { %p56_p5 = por %p55_p2, %p54_p0  ;;  %p657_p6 = por %p61_p4, %p60_p3 }
   0xc   : > { %p105_p7 = scmp.eq.s32.totalorder %s639_s16, 1  ;;  %p111_p8 = scmp.eq.s32.totalorder %s401_s17, 1 }
   0xd   : > { %p447_p10 = scmp.lt.s32.totalorder %s586_s15, 2  ;;  %s137_s25 = sand.u32 1, %s582_s14  }
   0xe   : > { %p664_p11 = por %p105_p7, %p54_p0  ;;  %p668_p12 = por %p111_p8, %p60_p3 }
   0xf   : > { %s417_s26 = sshll.u32 %s586_s15, 8  ;;  %s433_s27 = smul.u32 80, %s137_s25 }
  0x10   : > { %s807_s23 = scalar_select %p664_p11, 1, 0 }
  0x11   : > { %s808_s24 = scalar_select %p668_p12, 1, 0 }
  0x12   : > { %s677_s30 = scalar_lea.hbm %s802_s1, %s417_s26  ;;  %p679_p13 = pnand %p447_p10, %p56_p5 }
  0x13   : > { %s141_s5 = scalar_lea.vmem [#allocation2], %s433_s27  ;;  %s686_s7 = scalar_lea.sflag [#allocation3], %s137_s25 }
  0x14   : > { %s148_s6 = sshll.u32 %s141_s5, 4  ;;  %s490_s8 = scalar_lea.hbm %s677_s30, 1280  ;;  %s683_s6 = int_to_ptr.vmem [resolvable:$true] %s148_s6 }
  0x15   : > { %p491_p1 = scmp.ne.s32.totalorder %s677_s30, %s490_s8  ;;  %p492_p2 = pneg %p679_p13 }
  0x16   : > { %s495_s11 = scalar_lea.hbm %s802_s1, 2560  ;;  %p496_p5 = scmp.lt.u32.totalorder %s677_s30, %s802_s1 }
  0x17   : > { %p493_p3 = pnand %p492_p2, %p491_p1  ;;  %p497_p7 = scmp.lt.u32.totalorder %s495_s11, %s490_s8 }
  0x18   : > { %p499_p10 = scmp.lt.u32.totalorder %s490_s8, %s677_s30 }
  0x19   : > { %p494_p4 = pneg %p493_p3  ;;  %p498_p8 = por %p497_p7, %p496_p5 }
  0x1b   : > { %p500_p9 = por %p499_p10, %p498_p8 }
  0x1d   : > { %p501_p0 = pnand %p500_p9, %p494_p4 }
  0x1f   : > { %504 = shalt.err (!%p501_p0)
}
  0x20   : > { %s505_s20 = scalar_lea.vmem %s683_s6, 1280  ;;  %s588_s25 = smov [#allocation2]  }
  0x21   : > { %p506_p1 = scmp.ne.s32.totalorder %s683_s6, %s505_s20  ;;  %s510_s26 = sshll.u32 %s588_s25, 4  ;;  %s511_s26 = int_to_ptr.vmem [resolvable:$false] %s510_s26 }
  0x22   : > { %s512_s27 = scalar_lea.vmem %s511_s26, 2560  ;;  %p513_p11 = scmp.lt.s32.totalorder %s683_s6, %s511_s26 }
  0x23   : > { %p508_p3 = pnand %p506_p1, %p492_p2  ;;  %p514_p5 = scmp.lt.s32.totalorder %s512_s27, %s505_s20 }
  0x25   : > { %p509_p12 = pneg %p508_p3  ;;  %p515_p7 = por %p514_p5, %p513_p11 }
  0x27   : > { %p516_p8 = pnand %p515_p7, %p509_p12 }
  0x29   : > { %519 = shalt.err (!%p516_p8)
}
  0x2a   : > { %s589_s28 = smov 512   ;;  %s590_s29 = smov 256  }
  0x2b   : > { %s591_s5 = smov 16   ;;  %p156_p9 = scmp.lt.s32.totalorder %s586_s15, 3 }
  0x2c   : > { %442 = dma.hbm_to_vmem [thread:$0]  (!%p679_p13), %s677_s30, 1280, %s683_s6, %s686_s7, %s589_s28, %s590_s29, %s591_s5  }
  0x2d   : > { %p810_p0 = scmp.ge.s32.totalorder %s586_s15, 1 }
  0x2f   : > { %p157_p2 = pnand %p810_p0, %p156_p9 }
  0x30   : > { %s718_s8 = sand.u32 (!%p157_p2), 1, %s578_s13  }
  0x31   : > { %160 = sbr.rel (%p157_p2) target bundleno = 303 (0x12f), region = 32  ;;  %s163_s10 = scalar_lea.sflag (!%p157_p2), [#allocation3], %s718_s8 }
  0x32   : > { %s434_s9 = smul.u32 (!%p157_p2), 80, %s718_s8 }
  0x34   : > { %s722_s11 = scalar_lea.vmem (!%p157_p2), [#allocation2], %s434_s9 }
  0x38   : > { %565 = dma.done.wait (%p657_p6), %s163_s10, 1280  }
  0x39   : > { %567 = vsyncadd (%p657_p6), %s163_s10, 4294966016  ;;  %v592_v0 = vmov 0.0   ;;  %v593_v1 = vmov 0   ;;  %v194_v2 = vld [vmem:[%s722_s11 + $0x8] sm:$0xff]  ;;  %v196_v3 = vld [vmem:[%s722_s11 + $0x18] sm:$0xff]  ;;  %vm222_vm0 = vcmask 1043456  }
  0x3a   : > { %293 = vmatprep.mubr.f32.mxu0 %v592_v0  ;;  %299 = vmatprep.mubr.f32.mxu1 %v592_v0  ;;  %v193_v4 = vld [vmem:[%s722_s11] sm:$0xff]  ;;  %v419_v5 = vpack.c.bf16 %v196_v3, %v194_v2  ;;  %v195_v6 = vld [vmem:[%s722_s11 + $0x10] sm:$0xff]  ;;  %v198_v7 = vld [vmem:[%s722_s11 + $0x28] sm:$0xff]  ;;  %vm215_vm1 = vcmask 293888   ;;  %s407_s25 = sshll.u32 %s718_s8, 5  ;;  %s418_s28 = sshll.u32 %s639_s16, 8 }
  0x3b   : > { %489 = vset.pattern.permute.xlu0 %v593_v1  ;;  %v200_v8 = vld [vmem:[%s722_s11 + $0x38] sm:$0xff]  ;;  %v421_v9 = vpack.c.bf16 %v195_v6, %v193_v4  ;;  %v197_v11 = vld [vmem:[%s722_s11 + $0x20] sm:$0xff]  ;;  %v199_v12 = vld [vmem:[%s722_s11 + $0x30] sm:$0xff]  ;;  %s188_s26 = scalar_lea.vmem [#allocation5], %s407_s25  ;;  %s757_s9 = scalar_lea.hbm %s804_s3, %s418_s28 }
  0x3c   : > { %v423_v10 = vpack.c.bf16 %v200_v8, %v198_v7  ;;  %420 = vmatprep.subr.bf16.mxu0 %v419_v5  ;;  %427 = vmatprep.subr.bf16.mxu1 %v419_v5  ;;  %v425_v13 = vpack.c.bf16 %v199_v12, %v197_v11  ;;  %v203_v14 = vld [vmem:[%s803_s2] sm:$0xff]  ;;  %v202_v15 = vld [vmem:[%s722_s11 + $0x48] sm:$0xf]  ;;  %s328_s27 = sshll.u32 %s188_s26, 4  ;;  %s315_s16 = scalar_lea.sflag [#allocation4], %s718_s8  ;;  %s752_s27 = int_to_ptr.vmem [resolvable:$true] %s328_s27 }
  0x3d   : > { %422 = vmatpush1.bf16.msra.mxu0 %v421_v9  ;;  %430 = vmatpush1.bf16.msra.mxu1 %v421_v9  ;;  %v204_v16 = vld [vmem:[%s803_s2 + $0x8] sm:$0xff]  ;;  %v201_v17 = vld [vmem:[%s722_s11 + $0x40] sm:$0xf]  ;;  %s520_s10 = scalar_lea.vmem %s752_s27, 512  ;;  %p811_p11 = scmp.ne.s32.totalorder %s807_s23, 0 }
  0x3e   : > { %424 = vmatprep.subr.bf16.mxu0 %v423_v10  ;;  %428 = vmatprep.subr.bf16.mxu1 %v423_v10  ;;  %v191_v18 = vld [vmem:[%s801_s0] sm:$0xff]  ;;  %v192_v19 = vld [vmem:[%s801_s0 + $0x8] sm:$0xff]  ;;  %p521_p6 = scmp.ne.s32.totalorder %s752_s27, %s520_s10  ;;  %s594_s11 = smov [#allocation5]  }
  0x3f   : > { %207 = vperm.xlu0 %489, %v203_v14   ;;  %s524_s22 = sshll.u32 %s594_s11, 4  ;;  %s525_s22 = int_to_ptr.vmem [resolvable:$false] %s524_s22 }
  0x40   : > { %p522_p12 = pnand %p521_p6, %p811_p11  ;;  %s526_s30 = scalar_lea.vmem %s525_s22, 1024 }
  0x41   : > { %426 = vmatpush1.bf16.msra.mxu0 %v425_v13  ;;  %431 = vmatpush1.bf16.msra.mxu1 %v425_v13  ;;  %p527_p4 = scmp.lt.s32.totalorder %s752_s27, %s525_s22  ;;  %p528_p10 = scmp.lt.s32.totalorder %s526_s30, %s520_s10 }
  0x42   : > { %408 = vmatprep.subr.msk.mxu0 %vm222_vm0, %v202_v15  ;;  %429 = vmatprep.subr.msk.mxu1 %vm222_vm0, %v202_v15  ;;  %p523_p13 = pneg %p522_p12 }
  0x43   : > { %212 = vperm.xlu0 %489, %v204_v16   ;;  %p529_p1 = por %p528_p10, %p527_p4 }
  0x45   : > { %409 = vmatpush1.msk.msra.mxu0 %vm222_vm0, %v201_v17  ;;  %432 = vmatpush1.msk.msra.mxu1 %vm222_vm0, %v201_v17  ;;  %p530_p3 = pnand %p529_p1, %p523_p13 }
  0x46   : > { %410 = vmatmul.mubr.msk.f32.vlgmr.msra.gmra.mrb[0].mxu0 %vm215_vm1, %v191_v18  ;;  %411 = vmatmul.mubr.msk.f32.vlgmr.msra.gmra.mrb[0].mxu1 %vm215_vm1, %v192_v19 }
  0xbe   : > { %v208_v20 = vpop.permute.xlu0 %207 }
  0xc2   : > { %v213_v21 = vpop.permute.xlu0 %212 }
 0x119   : > { %v295_v22 = vpop.f32.mrb[0].mxu0  ;;  %v301_v23 = vpop.f32.mrb[0].mxu1 }
 0x11a   : > { %v296_v24 = vadd.f32 %v295_v22, %v208_v20  ;;  %v302_v25 = vadd.f32 %v301_v23, %v213_v21  ;;  %v297_v26 = vpop.f32.mrb[1].mxu0  ;;  %v303_v27 = vpop.f32.mrb[1].mxu1 }
 0x11b   : > { %v298_v28 = vadd.f32 %v297_v26, %v208_v20  ;;  %v304_v29 = vadd.f32 %v303_v27, %v213_v21 }
 0x11c   : > { %v306_v30 = vmax.f32 %v296_v24, 0.0  ;;  %v308_v31 = vmax.f32 %v302_v25, 0.0 }
 0x11d   : > { %v307_v32 = vmax.f32 %v298_v28, 0.0  ;;  %v309_v33 = vmax.f32 %v304_v29, 0.0 }
 0x11e   : > { %310 = vst [vmem:[%s188_s26] sm:$0xff] %v306_v30  ;;  %312 = vst [vmem:[%s188_s26 + $0x10] sm:$0xff] %v308_v31 }
 0x11f   : > { %311 = vst [vmem:[%s188_s26 + $0x8] sm:$0xff] %v307_v32  ;;  %313 = vst [vmem:[%s188_s26 + $0x18] sm:$0xff] %v309_v33 }
 0x120   : > { %533 = shalt.err (!%p530_p3)
}
 0x121   : > { %s534_s4 = scalar_lea.hbm %s757_s9, 512  ;;  %s538_s17 = scalar_lea.hbm %s804_s3, 1024 }
 0x122   : > { %p535_p5 = scmp.ne.s32.totalorder %s757_s9, %s534_s4  ;;  %p539_p9 = scmp.lt.u32.totalorder %s757_s9, %s804_s3 }
 0x123   : > { %p540_p0 = scmp.lt.u32.totalorder %s538_s17, %s534_s4  ;;  %p542_p6 = scmp.lt.u32.totalorder %s534_s4, %s757_s9 }
 0x124   : > { %p536_p7 = pnand %p535_p5, %p811_p11 }
 0x125   : > { %p541_p2 = por %p540_p0, %p539_p9 }
 0x126   : > { %p537_p8 = pneg %p536_p7 }
 0x127   : > { %p543_p12 = por %p542_p6, %p541_p2 }
 0x129   : > { %p544_p13 = pnand %p543_p12, %p537_p8 }
 0x12b   : > { %547 = shalt.err (!%p544_p13)
}
 0x12c   : > { %s595_s25 = smov 256   ;;  %s596_s26 = smov 512  }
 0x12d   : > { %s597_s28 = smov 16  }
 0x12e   : > { %437 = dma.vmem_to_hbm [thread:$0]  (%p811_p11), %s752_s27, 512, %s757_s9, %s315_s16, %s595_s25, %s596_s26, %s597_s28  }
 0x12f PF: > { %s343_s29 = sand.u32 1, %s574_s12   ;;  %p812_p4 = scmp.ne.s32.totalorder %s808_s24, 0 }
 0x130   : > { %p813_p10 = scmp.ge.s32.totalorder %s586_s15, 2  ;;  %s344_s5 = scalar_lea.sflag [#allocation4], %s343_s29 }
 0x132   : > { %p444_p1 = pnand %p813_p10, %p812_p4 }
 0x134   : > { %569 = dma.done.wait (!%p444_p1), %s344_s5, 512  }
 0x135   : > { %571 = vsyncadd (!%p444_p1), %s344_s5, 4294966784  ;;  %p16_p3 = scmp.ge.s32.totalorder %s643_s18, 4   ;;  %s814_s12 = smov %s578_s13 }
 0x136   : > { %s815_s13 = smov %s582_s14  ;;  %s816_s14 = smov %s655_s21 }
 0x137   : > { %s817_s15 = smov %s643_s18  ;;  %18 = sbr.rel (!%p16_p3) target bundleno = 5 (0x5), region = 77 }
 0x13e   :  { %349 = vsyncpa [#allocation3], 1 }
 0x13f   :  { %351 = vsyncpa [#allocation3 + $0x1], 1 }
 0x140   :  { %352 = vsyncpa [#allocation4], 1 }
 0x141   :  { %354 = vsyncpa [#allocation4 + $0x1], 1 }

</bundles_post_ra>
